<compile_context>
chip_gen: v6e
topology: v6e:2x2x1
jax: 0.10.0
libtpu: 0.0.40
codegen_flags: <defaults>
</compile_context>

<pallas_src>
import functools

import jax
import jax.numpy as jnp
from jax.experimental import pallas as pl
from jax.experimental.pallas import tpu as pltpu


_PER_TILE_INPUT_BUDGET = 2 * 1024 * 1024   # bytes of logits per tile (pre double-buffer)
_MAX_TILE_ROWS = 1024                      # diminishing returns past ~512-1024 rows
_MIN_GRID_STEPS = 4                        # keep both v7x cores + the DMA pipeline busy


def _round_up(x, m):
    return ((x + m - 1) // m) * m


def _sublane_align(dtype):
    # 8 rows for f32, 16 for bf16, 32 for 8-bit types (packed-sublane minimum).
    return max(8, 32 // jnp.dtype(dtype).itemsize)


def _ls_ce_kernel(n_valid_ref, pred_ref, tgt_ref, out_ref, *, smoothing, tile_n):
    i = pl.program_id(0)
    n_valid = n_valid_ref[0]

    x = pred_ref[...].astype(jnp.float32)                       # (TN, C) f32
    C = x.shape[-1]

    # ---- pass 1 over raw x: max, sum, target-logit extraction (fused) ----
    m = jnp.max(x, axis=-1, keepdims=True)                      # (TN, 1)
    sx = jnp.sum(x, axis=-1, keepdims=True)                     # (TN, 1)
    col = jax.lax.broadcasted_iota(jnp.int32, x.shape, 1)
    x_t = jnp.sum(jnp.where(col == tgt_ref[...], x, jnp.float32(0.0)),
                  axis=-1, keepdims=True)                       # (TN, 1) logit at target

    # ---- pass 2: the only remaining full-tile elementwise pass ----
    lse = jnp.log(jnp.sum(jnp.exp(x - m), axis=-1, keepdims=True))   # (TN, 1)

    # sum_j log_prob_j = sum_j (x_j - m - lse) = sx - C*(m + lse)
    # log_prob[target] = x_t - m - lse
    sum_logprob = sx - jnp.float32(C) * (m + lse)
    logprob_t = x_t - (m + lse)

    smooth_w = jnp.float32(smoothing / (C - 1.0))
    # loss_row = -sum_j w_j log_prob_j
    #          = -smooth_w * sum_logprob - (1 - smoothing - smooth_w) * log_prob[target]
    row_loss = (-smooth_w * sum_logprob
                - jnp.float32(1.0 - smoothing - smooth_w) * logprob_t)   # (TN, 1)

    # Row mask: rows past n_valid (partial edge block / tiny-batch pad) -> 0,
    # so any garbage/NaN from out-of-bounds reads never reaches the host sum.
    row_idx = i * tile_n + jax.lax.broadcasted_iota(jnp.int32, row_loss.shape, 0)
    out_ref[...] = jnp.where(row_idx < n_valid, row_loss, jnp.float32(0.0))


def label_smoothing_cross_entropy(pred, target, smoothing=0.1, tile_n=None):
    """pred: (N, C) float (f32 or bf16), target: (N,) int. Returns scalar f32 loss."""
    N, C = pred.shape
    itemsize = jnp.dtype(pred.dtype).itemsize
    align = _sublane_align(pred.dtype)

    # Degenerate tiny-batch case only: pad up to one sublane group (a few rows).
    # The general (large-N, non-divisible) case is never padded.
    n_rows = N
    if n_rows < align:
        pad = align - n_rows
        pred = jnp.pad(pred, ((0, pad), (0, 0)))
        target = jnp.pad(target, (0, pad))
        n_rows = align

    if tile_n is None:
        rows_fit = (_PER_TILE_INPUT_BUDGET // (C * itemsize)) // align * align
        steps_cap = _round_up(pl.cdiv(n_rows, _MIN_GRID_STEPS), align)
        tile_n = min(_MAX_TILE_ROWS, max(align, rows_fit), steps_cap)
    # Align and make sure the block never exceeds the array (partial edge blocks
    # past the end are fine; blocks larger than the whole array are not needed).
    tile_n = max(align, (min(tile_n, n_rows) // align) * align)

    num_tiles = pl.cdiv(n_rows, tile_n)
    tgt2d = target.astype(jnp.int32).reshape(n_rows, 1)
    n_valid = jnp.asarray([N], dtype=jnp.int32)     # scalar-prefetch SMEM arg

    kernel = functools.partial(_ls_ce_kernel, smoothing=float(smoothing), tile_n=tile_n)

    row_losses = pl.pallas_call(
        kernel,
        out_shape=jax.ShapeDtypeStruct((n_rows, 1), jnp.float32),
        grid_spec=pltpu.PrefetchScalarGridSpec(
            num_scalar_prefetch=1,
            grid=(num_tiles,),
            in_specs=[
                pl.BlockSpec((tile_n, C), lambda i, n: (i, 0)),
                pl.BlockSpec((tile_n, 1), lambda i, n: (i, 0)),
            ],
            out_specs=pl.BlockSpec((tile_n, 1), lambda i, n: (i, 0)),
        ),
        compiler_params=pltpu.CompilerParams(
            dimension_semantics=("parallel",),          # per-tile outputs are independent
            vmem_limit_bytes=32 * 1024 * 1024,          # > scoped defaults, << v7x 64 MiB
        ),
    )(n_valid, pred, tgt2d)

    # Tree-reduce the per-row partials and take the batch mean (masked rows are 0).
    return jnp.sum(row_losses) / jnp.float32(N)


def _reference(pred, target, smoothing=0.1):
    # Pure-JAX reference mirroring the PyTorch module.
    log_prob = jax.nn.log_softmax(pred.astype(jnp.float32), axis=-1)
    C = pred.shape[-1]
    w = jnp.full(pred.shape, smoothing / (C - 1.0), jnp.float32)
    w = w.at[jnp.arange(pred.shape[0]), target].set(1.0 - smoothing)
    return jnp.mean(jnp.sum(-w * log_prob, axis=-1))


if __name__ == "__main__":
    key = jax.random.PRNGKey(0)
    k1, k2, k3, k4 = jax.random.split(key, 4)

    # Case 1: small f32 batch (divisible tiling).
    N1, C1 = 16, 32
    pred1 = jax.random.normal(k1, (N1, C1), dtype=jnp.float32)
    tgt1 = jax.random.randint(k2, (N1,), 0, C1, dtype=jnp.int32)
    loss1 = jax.block_until_ready(label_smoothing_cross_entropy(pred1, tgt1, 0.1))
    ref1 = _reference(pred1, tgt1, 0.1)
    assert jnp.allclose(loss1, ref1, atol=1e-5, rtol=1e-5), (loss1, ref1)

    # Case 2: bf16 logits + ragged batch (exercises the pad-free partial edge block).
    N2, C2 = 19, 40
    pred2 = jax.random.normal(k3, (N2, C2), dtype=jnp.float32).astype(jnp.bfloat16)
    tgt2 = jax.random.randint(k4, (N2,), 0, C2, dtype=jnp.int32)
    loss2 = jax.block_until_ready(label_smoothing_cross_entropy(pred2, tgt2, 0.1))
    ref2 = _reference(pred2, tgt2, 0.1)
    assert jnp.allclose(loss2, ref2, atol=1e-4, rtol=1e-4), (loss2, ref2)

    print("KERNEL_OK")
</pallas_src>

<mosaic_0001>
module attributes {stable_mosaic.version = 11 : i64} {
  func.func @_ls_ce_kernel(%arg0: i32, %arg1: memref<1xi32, #tpu.memory_space<smem>>, %arg2: memref<8x32xf32, #tpu.memory_space<vmem>>, %arg3: memref<8x1xi32, #tpu.memory_space<vmem>>, %arg4: memref<8x1xf32, #tpu.memory_space<vmem>>) attributes {dimension_semantics = [#tpu.dimension_semantics<parallel>], iteration_bounds = array<i64: 2>, scalar_prefetch = 1 : i64, scratch_operands = 0 : i64, tpu.core_type = #tpu.core_type<tc>, window_params = [{transform_indices = @transform_0, window_bounds = array<i64: 8, 32>}, {transform_indices = @transform_1, window_bounds = array<i64: 8, 1>}, {transform_indices = @transform_2, window_bounds = array<i64: 8, 1>}]} {
    %c0 = arith.constant 0 : index
    %0 = memref.load %arg1[%c0] : memref<1xi32, #tpu.memory_space<smem>>
    %c0_0 = arith.constant 0 : index
    %c0_1 = arith.constant 0 : index
    %1 = vector.load %arg2[%c0_0, %c0_1] : memref<8x32xf32, #tpu.memory_space<vmem>>, vector<8x32xf32>
    %cst = arith.constant dense<0xFF800000> : vector<8xf32>
    %2 = vector.multi_reduction <maximumf>, %1, %cst [1] : vector<8x32xf32> to vector<8xf32>
    %3 = vector.shape_cast %2 : vector<8xf32> to vector<8x1xf32>
    %cst_2 = arith.constant dense<0.000000e+00> : vector<8xf32>
    %4 = vector.multi_reduction <add>, %1, %cst_2 [1] : vector<8x32xf32> to vector<8xf32>
    %5 = vector.shape_cast %4 : vector<8xf32> to vector<8x1xf32>
    %6 = tpu.iota {dimensions = array<i32: 1>} : vector<8x32xi32>
    %c0_3 = arith.constant 0 : index
    %c0_4 = arith.constant 0 : index
    %7 = vector.load %arg3[%c0_3, %c0_4] : memref<8x1xi32, #tpu.memory_space<vmem>>, vector<8x1xi32>
    %8 = vector.broadcast %7 : vector<8x1xi32> to vector<8x32xi32>
    %9 = arith.cmpi eq, %6, %8 : vector<8x32xi32>
    %cst_5 = arith.constant 0.000000e+00 : f32
    %10 = vector.broadcast %cst_5 : f32 to vector<8x32xf32>
    %11 = arith.select %9, %1, %10 : vector<8x32xi1>, vector<8x32xf32>
    %cst_6 = arith.constant dense<0.000000e+00> : vector<8xf32>
    %12 = vector.multi_reduction <add>, %11, %cst_6 [1] : vector<8x32xf32> to vector<8xf32>
    %13 = vector.shape_cast %12 : vector<8xf32> to vector<8x1xf32>
    %14 = vector.broadcast %3 : vector<8x1xf32> to vector<8x32xf32>
    %15 = arith.subf %1, %14 : vector<8x32xf32>
    %16 = math.exp %15 : vector<8x32xf32>
    %cst_7 = arith.constant dense<0.000000e+00> : vector<8xf32>
    %17 = vector.multi_reduction <add>, %16, %cst_7 [1] : vector<8x32xf32> to vector<8xf32>
    %18 = vector.shape_cast %17 : vector<8xf32> to vector<8x1xf32>
    %19 = math.log %18 : vector<8x1xf32>
    %20 = arith.addf %3, %19 : vector<8x1xf32>
    %cst_8 = arith.constant 3.200000e+01 : f32
    %21 = vector.broadcast %cst_8 : f32 to vector<8x1xf32>
    %22 = arith.mulf %21, %20 : vector<8x1xf32>
    %23 = arith.subf %5, %22 : vector<8x1xf32>
    %24 = arith.addf %3, %19 : vector<8x1xf32>
    %25 = arith.subf %13, %24 : vector<8x1xf32>
    %cst_9 = arith.constant 0.000000e+00 : f32
    %cst_10 = arith.constant 0.0032258064 : f32
    %26 = arith.subf %cst_9, %cst_10 : f32
    %27 = vector.broadcast %26 : f32 to vector<8x1xf32>
    %28 = arith.mulf %27, %23 : vector<8x1xf32>
    %cst_11 = arith.constant 0.899999976 : f32
    %cst_12 = arith.constant 0.0032258064 : f32
    %29 = arith.subf %cst_11, %cst_12 : f32
    %30 = vector.broadcast %29 : f32 to vector<8x1xf32>
    %31 = arith.mulf %30, %25 : vector<8x1xf32>
    %32 = arith.subf %28, %31 : vector<8x1xf32>
    %c8_i32 = arith.constant 8 : i32
    %33 = arith.muli %arg0, %c8_i32 : i32
    %34 = tpu.iota {dimensions = array<i32: 0>} : vector<8x1xi32>
    %35 = vector.broadcast %33 : i32 to vector<8x1xi32>
    %36 = arith.addi %35, %34 : vector<8x1xi32>
    %37 = vector.broadcast %0 : i32 to vector<8x1xi32>
    %38 = arith.cmpi slt, %36, %37 : vector<8x1xi32>
    %cst_13 = arith.constant 0.000000e+00 : f32
    %39 = vector.broadcast %cst_13 : f32 to vector<8x1xf32>
    %40 = arith.select %38, %32, %39 : vector<8x1xi1>, vector<8x1xf32>
    %c0_14 = arith.constant 0 : index
    %c0_15 = arith.constant 0 : index
    %41 = vector.load %arg4[%c0_14, %c0_15] : memref<8x1xf32, #tpu.memory_space<vmem>>, vector<8x1xf32>
    tpu.vector_store %arg4[%c0_14, %c0_15], %40 {strides = array<i32>} : memref<8x1xf32, #tpu.memory_space<vmem>>, vector<8x1xf32>,
    return
  }
  func.func @transform_0(%arg0: i32, %arg1: memref<1xi32, #tpu.memory_space<smem>>) -> (i32, i32) {
    %c0_i32 = arith.constant 0 : i32
    %c0_i32_0 = arith.constant 0 : i32
    return %arg0, %c0_i32 : i32, i32
  }
  func.func @transform_1(%arg0: i32, %arg1: memref<1xi32, #tpu.memory_space<smem>>) -> (i32, i32) {
    %c0_i32 = arith.constant 0 : i32
    %c0_i32_0 = arith.constant 0 : i32
    return %arg0, %c0_i32 : i32, i32
  }
  func.func @transform_2(%arg0: i32, %arg1: memref<1xi32, #tpu.memory_space<smem>>) -> (i32, i32) {
    %c0_i32 = arith.constant 0 : i32
    %c0_i32_0 = arith.constant 0 : i32
    return %arg0, %c0_i32 : i32, i32
  }
}

</mosaic_0001>

<bundles_post_ra>
// kernel: tpu_custom_call.1
= control target key start
LH: loop header
LB: loop body
LE: loop exit
PB: predicated region body
PF: predicated region fallthrough
CT: control target
= control target key end

     0   :  { %s325_s14 = smov 0   ;;  %s359_s0 = inlined_call_operand.<no memory space> [shape: s32[1], index: 0, kind: input, shape index: {}]   ;;  %s360_s1 = inlined_call_operand.vmem [shape: f32[16,32], index: 1, kind: input, shape index: {}]   ;;  %s361_s2 = inlined_call_operand.vmem [shape: s32[16,1], index: 2, kind: input, shape index: {}]   ;;  %s362_s3 = inlined_call_operand.vmem [shape: f32[16,1], index: 3, kind: output, shape index: {}]  }
   0x1   :  { %8 = sst [smem:[#allocation3]] %s359_s0 }
   0x2 LB: > { %s331_s15 = sadd.s32 4294967295, %s299_s14   ;;  %p272_p0 = scmp.ge.s32.totalorder %s299_s14, 1  ;;  %s299_s14 = sphi %s325_s14, %s14_s14  }
   0x3   : > { %p122_p1 = scmp.lt.s32.totalorder %s299_s14, 3 }
   0x5   : > { %p123_p2 = pnand %p272_p0, %p122_p1 }
   0x6   : > { %p146_p3 = scmp.lt.s32.totalorder (!%p123_p2), %s331_s15, 1  ;;  %s158_s23 = sld [smem:[#allocation3]] (!%p123_p2) }
   0x7   : > { %126 = sbr.rel (%p123_p2) target bundleno = 341 (0x155), region = 28  ;;  %s276_s24 = sshll.u32 (!%p123_p2), %s331_s15, 3 }
   0xc   : > { %v301_v0 = vmov 0   ;;  %s147_s0 = scalar_select %p146_p3, %s331_s15, 1  ;;  %vm160_vm0 = vcmask 261120   ;;  %v167_v7 = vlaneseq  ;;  %v196_v22 = vstv %s276_s24 }
   0xd   : > { %288 = vset.pattern.permute.xlu0 %v301_v0  ;;  %v198_v27 = vstv %s158_s23  ;;  %vm201_vm3 = vcmask 7168  }
   0xe   : > { %s337_s16 = sshll.u32 %s147_s0, 3  ;;  %v168_v8 = vand.u32 127, %v167_v7  ;;  %v195_v19 = vshrl.u32 %v167_v7, 7 }
   0xf   : > { %s149_s19 = scalar_lea.vmem %s360_s1, %s337_s16  ;;  %s153_s22 = scalar_lea.vmem %s361_s2, %s337_s16 }
  0x10   : > { %v159_v1 = vld [vmem:[%s149_s19] sm:$0xff]  ;;  %v197_v25 = vadd.s32 %v196_v22, %v195_v19  ;;  %s157_s27 = scalar_lea.vmem %s362_s3, %s337_s16 }
  0x11   : > { %v161_v2 = vsel %vm160_vm0, %v159_v1, -inf  ;;  %v169_v3 = vld [vmem:[%s153_s22] sm:$0xff]  ;;  %v164_v12 = vsel %vm160_vm0, %v159_v1, 0.0 }
  0x12   : > { %162 = vmax.xlane.f32.xlu0 %v161_v2  ;;  %vm199_vm2 = vcmp.lt.s32.totalorder %v197_v25, %v198_v27 }
  0x28   : > { %171 = vperm.xlu0 %288, %v169_v3  }
  0x9b   : > { %v163_v4 = vpop.xlane.xlu0 %162 }
  0x9c   : > { %v178_v5 = vsub.f32 %v159_v1, %v163_v4 }
  0x9e   : > { %v179_v6 = vmul.f32 1.442695, %v178_v5 }
  0xa0   : > { %289 = vpow2.f32 %v179_v6 }
  0xa3   : > { %v172_v9 = vpop.permute.xlu0 %171 }
  0xa4   : > { %vm173_vm1 = vcmp.eq.s32.totalorder %v168_v8, %v172_v9 }
  0xa5   : > { %v174_v13 = vsel %vm173_vm1, %v159_v1, 0.0 }
  0xa6   : > { %v175_v14 = vsel %vm160_vm0, %v174_v13, 0.0 }
  0xad   : > { %v290_v10 = vpop.eup %289 }
  0xae   : > { %v181_v11 = vsel %vm160_vm0, %v290_v10, 0.0 }
  0xaf   : > { %182 = vadd.xlane.f32.xlu1 %v181_v11 }
  0xb3   : > { %165 = vadd.xlane.f32.xlu1 %v164_v12 }
  0xb7   : > { %176 = vadd.xlane.f32.xlu1 %v175_v14 }
 0x138   : > { %v183_v15 = vpop.xlane.xlu1 %182 }
 0x139   : > { %291 = vlog2.f32 %v183_v15 }
 0x13c   : > { %v166_v16 = vpop.xlane.xlu1 %165 }
 0x140   : > { %v177_v20 = vpop.xlane.xlu1 %176 }
 0x146   : > { %v292_v17 = vpop.eup %291 }
 0x147   : > { %v185_v18 = vmul.f32 0.6931472, %v292_v17 }
 0x149   : > { %v186_v21 = vadd.f32 %v185_v18, %v163_v4 }
 0x14b   : > { %v187_v23 = vmul.f32 32.0, %v186_v21  ;;  %v189_v24 = vsub.f32 %v177_v20, %v186_v21 }
 0x14d   : > { %v188_v26 = vsub.f32 %v166_v16, %v187_v23  ;;  %v191_v29 = vmul.f32 0.8967742, %v189_v24 }
 0x14f   : > { %v190_v28 = vmul.f32 -0.0032258064, %v188_v26 }
 0x151   : > { %v192_v30 = vsub.f32 %v190_v28, %v191_v29 }
 0x153   : > { %v200_v31 = vsel %vm199_vm2, %v192_v30, 0.0 }
 0x154   : > { %202 = vst.msk [vmem:[%s157_s27] sm:$0xff] %vm201_vm3, %v200_v31 }
 0x155 PF: > { %s14_s14 = sadd.s32 1, %s299_s14  }
 0x156   : > { %p11_p4 = scmp.ge.s32.totalorder %s14_s14, 4  }
 0x158   :  { %13 = sbr.rel (!%p11_p4) target bundleno = 2 (0x2), region = 61 }

</bundles_post_ra>
